<compile_context>
chip_gen: v7x
topology: tpu7x:2x2x1
jax: 0.10.0
libtpu: 0.0.40
codegen_flags: <defaults>
</compile_context>

<pallas_src>
import functools

import jax
import jax.numpy as jnp
from jax import lax
from jax.experimental import pallas as pl
from jax.experimental.pallas import tpu as pltpu

LANES = 128
SUBLANES = 8
TM_MAX = 4096  # rows per grid step; 4096*128*4B = 2 MiB per f32 input tile


def _cdiv(a, b):
    return -(-a // b)


def _round_up(x, m):
    return (x + m - 1) // m * m


def _qfocal_kernel(pred_ref, true_ref, out_ref, *, gamma, alpha,
                   valid_in_last, block_elems):
    p = pred_ref[...].astype(jnp.float32)
    t = true_ref[...].astype(jnp.float32)

    # Shared transcendental: e = exp(-|p|) feeds both the numerically-stable
    # BCE-with-logits (max(p,0) - p*t + log1p(e)) and the sigmoid.
    e = jnp.exp(-jnp.abs(p))
    bce = jnp.maximum(p, 0.0) - p * t + jnp.log1p(e)
    #   p >= 0: sigmoid(p) = 1/(1+e);  p < 0: sigmoid(p) = e/(1+e)
    prob = jnp.where(p >= 0.0, 1.0, e) * pl.reciprocal(1.0 + e, approx=True)

    # t*alpha + (1-t)*(1-alpha) == (1-alpha) + (2*alpha-1)*t  (constants folded)
    alpha_factor = (1.0 - alpha) + (2.0 * alpha - 1.0) * t
    m = jnp.abs(t - prob)
    if gamma == 1.5:
        modulating = m * jnp.sqrt(m)          # 1 EUP op instead of exp(g*log(m))
    elif gamma == 2.0:
        modulating = m * m
    elif gamma == 1.0:
        modulating = m
    else:
        modulating = m ** gamma               # generic fallback (needs gamma > 0)

    loss = bce * alpha_factor * modulating

    tm = loss.shape[0]

    def partial_sum(x):
        # (tm,128) -> (tm//8, 8, 128); summing axis 0 is pure elementwise vreg
        # adds on the VPU (no cross-lane XLU reduce on the per-step path).
        return jnp.sum(x.reshape(tm // SUBLANES, SUBLANES, LANES), axis=0)

    if valid_in_last == block_elems:
        # No ragged tail anywhere: every block is fully valid, no masking.
        out_ref[...] = partial_sum(loss)
    else:
        is_last = pl.program_id(0) == pl.num_programs(0) - 1

        @pl.when(jnp.logical_not(is_last))
        def _():
            out_ref[...] = partial_sum(loss)

        @pl.when(is_last)
        def _():
            # True select (not a 0/1 multiply) so garbage / inf / NaN from the
            # out-of-bounds part of the last block cannot leak into the sum.
            idx = (lax.broadcasted_iota(jnp.int32, loss.shape, 0) * LANES
                   + lax.broadcasted_iota(jnp.int32, loss.shape, 1))
            out_ref[...] = partial_sum(jnp.where(idx < valid_in_last, loss, 0.0))


def qfocal_loss(pred, true, gamma=1.5, alpha=0.25, reduction="mean"):
    """QFocalLoss forward (loss_fcn = BCEWithLogitsLoss) on TPU via Pallas."""
    assert pred.shape == true.shape
    n = pred.size
    assert n > 0, "qfocal_loss: empty input"
    # TODO(synk): reduction='none' (full elementwise output) not implemented.
    assert reduction in ("mean", "sum")

    # Sublane alignment: 8 rows for >=32-bit inputs, 16 for 16-bit, 32 for 8-bit.
    min_itemsize = min(pred.dtype.itemsize, true.dtype.itemsize)
    align = SUBLANES * max(1, 4 // int(min_itemsize))

    # Lane-dense (rows, 128) view. Inputs are passed through in their own dtype
    # (bf16 stays bf16 -> half the HBM read); the kernel widens in-register.
    rows = _cdiv(n, LANES)
    p_flat = pred.reshape(-1)
    t_flat = true.reshape(-1)
    if rows * LANES != n:
        # Only the ragged tail forces a host copy; round rows to the sublane
        # alignment while we're at it (pad values are irrelevant: masked away).
        rows = _round_up(rows, align)
        pad = rows * LANES - n
        p_flat = jnp.pad(p_flat, (0, pad))
        t_flat = jnp.pad(t_flat, (0, pad))
    p2 = p_flat.reshape(rows, LANES)
    t2 = t_flat.reshape(rows, LANES)

    tm = min(TM_MAX, _round_up(rows, align))
    # Give megacore (v7x) at least two grid steps when the whole input would
    # otherwise collapse into a single tile.
    if _cdiv(rows, tm) == 1 and rows > align:
        tm = _round_up(_cdiv(rows, 2), align)
    num_blocks = _cdiv(rows, tm)
    valid_in_last = n - (num_blocks - 1) * tm * LANES  # elements valid in last block

    kern = functools.partial(
        _qfocal_kernel,
        gamma=float(gamma),
        alpha=float(alpha),
        valid_in_last=int(valid_in_last),
        block_elems=tm * LANES,
    )

    # VMEM budget: 2 inputs x 2 pipeline buffers + headroom for f32 temporaries;
    # capped at 56 MiB so it stays under v7x's 64 MiB physical VMEM.
    in_bytes = 2 * tm * LANES * (pred.dtype.itemsize + true.dtype.itemsize)
    vmem_limit = int(min(56 << 20, max(24 << 20, in_bytes + 12 * tm * LANES * 4)))

    partials = pl.pallas_call(
        kern,
        out_shape=jax.ShapeDtypeStruct((num_blocks * SUBLANES, LANES), jnp.float32),
        grid_spec=pltpu.PrefetchScalarGridSpec(
            num_scalar_prefetch=0,
            grid=(num_blocks,),
            in_specs=[
                pl.BlockSpec((tm, LANES), lambda i: (i, 0)),
                pl.BlockSpec((tm, LANES), lambda i: (i, 0)),
            ],
            out_specs=pl.BlockSpec((SUBLANES, LANES), lambda i: (i, 0)),
        ),
        compiler_params=pltpu.CompilerParams(
            dimension_semantics=("parallel",),  # no carried state -> megacore OK
            vmem_limit_bytes=vmem_limit,
        ),
    )(p2, t2)

    total = jnp.sum(partials)
    if reduction == "sum":
        return total
    # 'mean' over the ORIGINAL element count (masked tail contributes 0).
    return total / jnp.float32(n)


def _qfocal_ref(pred, true, gamma=1.5, alpha=0.25):
    p = pred.astype(jnp.float32)
    t = true.astype(jnp.float32)
    bce = jnp.maximum(p, 0.0) - p * t + jnp.log1p(jnp.exp(-jnp.abs(p)))
    prob = jax.nn.sigmoid(p)
    af = t * alpha + (1.0 - t) * (1.0 - alpha)
    mf = jnp.abs(t - prob) ** gamma
    return jnp.mean(bce * af * mf)


if __name__ == "__main__":
    key = jax.random.PRNGKey(0)
    k1, k2, k3, k4 = jax.random.split(key, 4)

    # NCHW, small shapes: [2, 4, 16, 16]
    pred = jax.random.normal(k1, (2, 4, 16, 16), dtype=jnp.float32) * 2.0
    # quality focal target: continuous soft labels in [0, 1]
    true = jax.random.uniform(k2, (2, 4, 16, 16), dtype=jnp.float32)

    out = jax.block_until_ready(qfocal_loss(pred, true, gamma=1.5, alpha=0.25))
    ref = _qfocal_ref(pred, true, gamma=1.5, alpha=0.25)
    # approx=True reciprocal -> slightly looser tolerance than exact-divide path.
    assert jnp.allclose(out, ref, rtol=2e-3, atol=1e-5), (out, ref)

    # Ragged element count (not a multiple of 128) to exercise the tail mask.
    pred_r = jax.random.normal(k3, (2, 3, 7, 11), dtype=jnp.float32) * 2.0
    true_r = jax.random.uniform(k4, (2, 3, 7, 11), dtype=jnp.float32)
    out_r = jax.block_until_ready(qfocal_loss(pred_r, true_r))
    ref_r = _qfocal_ref(pred_r, true_r)
    assert jnp.allclose(out_r, ref_r, rtol=2e-3, atol=1e-5), (out_r, ref_r)

    print("KERNEL_OK")
</pallas_src>

<mosaic_0001>
module attributes {stable_mosaic.version = 11 : i64} {
  func.func @_qfocal_kernel(%arg0: i32, %arg1: memref<8x128xf32, #tpu.memory_space<vmem>>, %arg2: memref<8x128xf32, #tpu.memory_space<vmem>>, %arg3: memref<8x128xf32, #tpu.memory_space<vmem>>) attributes {dimension_semantics = [#tpu.dimension_semantics<parallel>], iteration_bounds = array<i64: 2>, scalar_prefetch = 0 : i64, scratch_operands = 0 : i64, tpu.core_type = #tpu.core_type<tc>, window_params = [{transform_indices = @transform_0, window_bounds = array<i64: 8, 128>}, {transform_indices = @transform_1, window_bounds = array<i64: 8, 128>}, {transform_indices = @transform_2, window_bounds = array<i64: 8, 128>}]} {
    %c0 = arith.constant 0 : index
    %c0_0 = arith.constant 0 : index
    %0 = vector.load %arg1[%c0, %c0_0] : memref<8x128xf32, #tpu.memory_space<vmem>>, vector<8x128xf32>
    %c0_1 = arith.constant 0 : index
    %c0_2 = arith.constant 0 : index
    %1 = vector.load %arg2[%c0_1, %c0_2] : memref<8x128xf32, #tpu.memory_space<vmem>>, vector<8x128xf32>
    %2 = math.absf %0 : vector<8x128xf32>
    %cst = arith.constant 0.000000e+00 : f32
    %3 = vector.broadcast %cst : f32 to vector<8x128xf32>
    %4 = arith.subf %3, %2 : vector<8x128xf32>
    %5 = math.exp %4 : vector<8x128xf32>
    %cst_3 = arith.constant 0.000000e+00 : f32
    %6 = vector.broadcast %cst_3 : f32 to vector<8x128xf32>
    %7 = arith.maximumf %0, %6 : vector<8x128xf32>
    %8 = arith.mulf %0, %1 : vector<8x128xf32>
    %9 = arith.subf %7, %8 : vector<8x128xf32>
    %10 = math.log1p %5 : vector<8x128xf32>
    %11 = arith.addf %9, %10 : vector<8x128xf32>
    %cst_4 = arith.constant 0.000000e+00 : f32
    %12 = vector.broadcast %cst_4 : f32 to vector<8x128xf32>
    %13 = arith.cmpf oge, %0, %12 : vector<8x128xf32>
    %cst_5 = arith.constant 1.000000e+00 : f32
    %14 = vector.broadcast %cst_5 : f32 to vector<8x128xf32>
    %15 = arith.select %13, %14, %5 : vector<8x128xi1>, vector<8x128xf32>
    %cst_6 = arith.constant 1.000000e+00 : f32
    %16 = vector.broadcast %cst_6 : f32 to vector<8x128xf32>
    %17 = arith.addf %16, %5 : vector<8x128xf32>
    %18 = tpu.reciprocal %17 {approx = true} : vector<8x128xf32> -> vector<8x128xf32>
    %19 = arith.mulf %15, %18 : vector<8x128xf32>
    %cst_7 = arith.constant -5.000000e-01 : f32
    %20 = vector.broadcast %cst_7 : f32 to vector<8x128xf32>
    %21 = arith.mulf %20, %1 : vector<8x128xf32>
    %cst_8 = arith.constant 7.500000e-01 : f32
    %22 = vector.broadcast %cst_8 : f32 to vector<8x128xf32>
    %23 = arith.addf %22, %21 : vector<8x128xf32>
    %24 = arith.subf %1, %19 : vector<8x128xf32>
    %25 = math.absf %24 : vector<8x128xf32>
    %26 = math.sqrt %25 : vector<8x128xf32>
    %27 = arith.mulf %25, %26 : vector<8x128xf32>
    %28 = arith.mulf %11, %23 : vector<8x128xf32>
    %29 = arith.mulf %28, %27 : vector<8x128xf32>
    %30 = vector.shape_cast %29 : vector<8x128xf32> to vector<1x8x128xf32>
    %cst_9 = arith.constant dense<0.000000e+00> : vector<8x128xf32>
    %31 = vector.multi_reduction <add>, %30, %cst_9 [0] : vector<1x8x128xf32> to vector<8x128xf32>
    %c0_10 = arith.constant 0 : index
    %c0_11 = arith.constant 0 : index
    %32 = vector.load %arg3[%c0_10, %c0_11] : memref<8x128xf32, #tpu.memory_space<vmem>>, vector<8x128xf32>
    tpu.vector_store %arg3[%c0_10, %c0_11], %31 {strides = array<i32>} : memref<8x128xf32, #tpu.memory_space<vmem>>, vector<8x128xf32>,
    return
  }
  func.func @transform_0(%arg0: i32) -> (i32, i32) {
    %c0_i32 = arith.constant 0 : i32
    %c0_i32_0 = arith.constant 0 : i32
    return %arg0, %c0_i32 : i32, i32
  }
  func.func @transform_1(%arg0: i32) -> (i32, i32) {
    %c0_i32 = arith.constant 0 : i32
    %c0_i32_0 = arith.constant 0 : i32
    return %arg0, %c0_i32 : i32, i32
  }
  func.func @transform_2(%arg0: i32) -> (i32, i32) {
    %c0_i32 = arith.constant 0 : i32
    %c0_i32_0 = arith.constant 0 : i32
    return %arg0, %c0_i32 : i32, i32
  }
}

</mosaic_0001>

<bundles_post_ra>
// kernel: tpu_custom_call.1
= control target key start
LH: loop header
LB: loop body
LE: loop exit
PB: predicated region body
PF: predicated region fallthrough
CT: control target
= control target key end

     0   :  { %7 = vsyncpa [#allocation3], 0  ;;  %s781_s0 = inlined_call_operand.hbm [shape: f32[16,128], index: 0, kind: input, shape index: {}]   ;;  %s782_s1 = inlined_call_operand.hbm [shape: f32[16,128], index: 1, kind: input, shape index: {}]   ;;  %s783_s2 = inlined_call_operand.hbm [shape: f32[16,128], index: 2, kind: output, shape index: {}]  }
   0x1   :  { %9 = vsyncpa [#allocation3 + $0x1], 0 }
   0x2   :  { %10 = vsyncpa [#allocation6], 0 }
   0x3   :  { %12 = vsyncpa [#allocation6 + $0x1], 0 }
   0x4   :  { %13 = vsyncpa [#allocation4], 0 }
   0x5   :  { %15 = vsyncpa [#allocation4 + $0x1], 0  ;;  %s567_s9 = smov 0   ;;  %s569_s10 = smov 0  }
   0x6   :  { %s571_s11 = smov 0   ;;  %s573_s12 = smov 0  }
   0x7 LB: > { %s588_s13 = sadd.s32 4294967295, %s547_s12   ;;  %s343_s14 = sadd.s32 4294967294, %s547_s12   ;;  %s547_s12 = sphi %s573_s12, %s802_s12   ;;  %s543_s11 = sphi %s571_s11, %s801_s11   ;;  %s539_s10 = sphi %s569_s10, %s800_s10   ;;  %s535_s9 = sphi %s567_s9, %s799_s9  }
   0x8   : > { %s592_s15 = sadd.s32 1, %s547_s12   ;;  %s28_s16 = sadd.s32 1, %s543_s11 }
   0x9   : > { %s25_s17 = ssub.s32 %s547_s12, %s592_s15  ;;  %p35_p0 = scmp.ne.s32.totalorder %s543_s11, %s539_s10 }
   0xa   : > { %p26_p1 = scmp.eq.s32.totalorder %s25_s17, 0  ;;  %p36_p2 = scmp.eq.s32.totalorder %s547_s12, 0 }
   0xb   : > { %p41_p3 = scmp.ne.s32.totalorder %s539_s10, %s535_s9  ;;  %p42_p4 = scmp.eq.s32.totalorder %s588_s13, 0 }
   0xc   : > { %s604_s18 = scalar_select %p26_p1, %s543_s11, %s28_s16  }
   0xd   : > { %p606_p5 = por %p36_p2, %p35_p0  ;;  %p610_p6 = por %p42_p4, %p41_p3 }
   0xe   : > { %p91_p7 = scmp.eq.s32.totalorder %s588_s13, 1  ;;  %p97_p8 = scmp.eq.s32.totalorder %s343_s14, 1 }
   0xf   : > { %s787_s20 = scalar_select %p610_p6, 1, 0 }
  0x10   : > { %p375_p10 = scmp.lt.s32.totalorder %s547_s12, 2  ;;  %p617_p11 = por %p91_p7, %p35_p0 }
  0x11   : > { %p621_p12 = por %p97_p8, %p41_p3  ;;  %s626_s23 = sand.u32 1, %s543_s11  }
  0x12   : > { %s788_s21 = scalar_select %p617_p11, 1, 0 }
  0x13   : > { %s789_s22 = scalar_select %p621_p12, 1, 0 }
  0x14   : > { %s347_s24 = sshll.u32 %s547_s12, 7  ;;  %s346_s25 = sshll.u32 %s626_s23, 3 }
  0x15   : > { %s635_s28 = scalar_lea.hbm %s781_s0, %s347_s24  ;;  %s121_s29 = scalar_lea.vmem [#allocation2], %s346_s25 }
  0x16   : > { %s128_s30 = sshll.u32 %s121_s29, 4  ;;  %p641_p13 = pnand %p375_p10, %p606_p5  ;;  %s645_s30 = int_to_ptr.vmem [resolvable:$true] %s128_s30 }
  0x17   : > { %s118_s4 = scalar_lea.sflag [#allocation3], %s626_s23  ;;  %s417_s5 = scalar_lea.hbm %s635_s28, 128 }
  0x18   : > { %p418_p2 = scmp.ne.s32.totalorder %s635_s28, %s417_s5  ;;  %p419_p3 = pneg %p641_p13 }
  0x19   : > { %s422_s8 = scalar_lea.hbm %s781_s0, 256  ;;  %p423_p5 = scmp.lt.u32.totalorder %s635_s28, %s781_s0 }
  0x1a   : > { %p420_p4 = pnand %p419_p3, %p418_p2  ;;  %p424_p8 = scmp.lt.u32.totalorder %s422_s8, %s417_s5 }
  0x1b   : > { %p426_p9 = scmp.lt.u32.totalorder %s417_s5, %s635_s28 }
  0x1c   : > { %p421_p7 = pneg %p420_p4  ;;  %p425_p10 = por %p424_p8, %p423_p5 }
  0x1e   : > { %p427_p0 = por %p426_p9, %p425_p10 }
  0x20   : > { %p428_p1 = pnand %p427_p0, %p421_p7 }
  0x22   : > { %431 = shalt.err (!%p428_p1)
}
  0x23   : > { %s432_s17 = scalar_lea.vmem %s645_s30, 128  ;;  %s549_s19 = smov [#allocation2]  }
  0x24   : > { %p433_p2 = scmp.ne.s32.totalorder %s645_s30, %s432_s17  ;;  %s437_s26 = sshll.u32 %s549_s19, 4  ;;  %s438_s26 = int_to_ptr.vmem [resolvable:$false] %s437_s26 }
  0x25   : > { %s439_s27 = scalar_lea.vmem %s438_s26, 256  ;;  %p440_p11 = scmp.lt.s32.totalorder %s645_s30, %s438_s26 }
  0x26   : > { %p435_p4 = pnand %p433_p2, %p419_p3  ;;  %p441_p5 = scmp.lt.s32.totalorder %s439_s27, %s432_s17 }
  0x28   : > { %p436_p12 = pneg %p435_p4  ;;  %p442_p8 = por %p441_p5, %p440_p11 }
  0x2a   : > { %p443_p9 = pnand %p442_p8, %p436_p12 }
  0x2c   : > { %446 = shalt.err (!%p443_p9)
}
  0x2d   : > { %367 = dma.hbm_to_vmem [thread:$0]  (!%p641_p13), %s635_s28, 128, %s645_s30, %s118_s4  }
  0x2e   : > { %p791_p0 = scmp.lt.s32.totalorder %s547_s12, 3  ;;  %p792_p1 = scmp.ge.s32.totalorder %s547_s12, 1 }
  0x2f   : > { %s688_s7 = scalar_lea.hbm %s782_s1, %s347_s24  ;;  %s139_s8 = scalar_lea.vmem [#allocation5], %s346_s25 }
  0x30   : > { %p679_p7 = pnand %p792_p1, %p791_p0  ;;  %s146_s14 = sshll.u32 %s139_s8, 4  ;;  %s147_s14 = int_to_ptr.vmem [resolvable:$true] %s146_s14 }
  0x31   : > { %s136_s28 = scalar_lea.sflag [#allocation6], %s626_s23  ;;  %s447_s30 = scalar_lea.hbm %s688_s7, 128 }
  0x32   : > { %s793_s29 = scalar_select %p679_p7, 1, 0 }
  0x33   : > { %p448_p11 = scmp.ne.s32.totalorder %s688_s7, %s447_s30  ;;  %s452_s24 = scalar_lea.hbm %s782_s1, 256 }
  0x34   : > { %p453_p2 = scmp.lt.u32.totalorder %s688_s7, %s782_s1  ;;  %p454_p4 = scmp.lt.u32.totalorder %s452_s24, %s447_s30 }
  0x35   : > { %p450_p12 = pnand %p448_p11, %p419_p3  ;;  %p456_p8 = scmp.lt.u32.totalorder %s447_s30, %s688_s7 }
  0x36   : > { %p455_p5 = por %p454_p4, %p453_p2 }
  0x37   : > { %p451_p10 = pneg %p450_p12 }
  0x38   : > { %p457_p9 = por %p456_p8, %p455_p5 }
  0x3a   : > { %p458_p0 = pnand %p457_p9, %p451_p10 }
  0x3c   : > { %461 = shalt.err (!%p458_p0)
}
  0x3d   : > { %s462_s23 = scalar_lea.vmem %s147_s14, 128  ;;  %s550_s25 = smov [#allocation5]  }
  0x3e   : > { %p463_p1 = scmp.ne.s32.totalorder %s147_s14, %s462_s23  ;;  %s467_s26 = sshll.u32 %s550_s25, 4  ;;  %s468_s26 = int_to_ptr.vmem [resolvable:$false] %s467_s26 }
  0x3f   : > { %s469_s27 = scalar_lea.vmem %s468_s26, 256  ;;  %p470_p6 = scmp.lt.s32.totalorder %s147_s14, %s468_s26 }
  0x40   : > { %p465_p11 = pnand %p463_p1, %p419_p3  ;;  %p471_p7 = scmp.lt.s32.totalorder %s469_s27, %s462_s23 }
  0x42   : > { %p466_p12 = pneg %p465_p11  ;;  %p472_p2 = por %p471_p7, %p470_p6 }
  0x44   : > { %p473_p4 = pnand %p472_p2, %p466_p12 }
  0x46   : > { %476 = shalt.err (!%p473_p4)
}
  0x47   : > { %370 = dma.hbm_to_vmem [thread:$0]  (!%p641_p13), %s688_s7, 128, %s147_s14, %s136_s28  }
  0x48   : > { %p794_p10 = scmp.ne.s32.totalorder %s793_s29, 0 }
  0x49   : > { %s715_s5 = sand.u32 (!%p794_p10), 1, %s539_s10   ;;  %p795_p6 = scmp.ne.s32.totalorder (!%p794_p10), %s787_s20, 0 }
  0x4a   : > { %155 = sbr.rel (%p794_p10) target bundleno = 154 (0x9a), region = 28  ;;  %s718_s6 = sshll.u32 (!%p794_p10), %s715_s5, 3 }
  0x4b   : > { %s158_s8 = scalar_lea.sflag (!%p794_p10), [#allocation3], %s715_s5  ;;  %s161_s30 = scalar_lea.vmem (!%p794_p10), [#allocation2], %s718_s6 }
  0x51   : > { %522 = dma.done.wait (%p795_p6), %s158_s8, 128  }
  0x52   : > { %524 = vsyncadd (%p795_p6), %s158_s8, 4294967168  ;;  %s167_s3 = scalar_lea.sflag [#allocation6], %s715_s5  ;;  %s170_s29 = scalar_lea.vmem [#allocation5], %s718_s6 }
  0x53   : > { %526 = dma.done.wait (%p795_p6), %s167_s3, 128  }
  0x54   : > { %528 = vsyncadd (%p795_p6), %s167_s3, 4294967168  ;;  %v196_v0 = vld [vmem:[%s161_s30] sm:$0xff]  ;;  %v197_v8 = vld [vmem:[%s170_s29] sm:$0xff]  ;;  %s195_s20 = scalar_lea.vmem [#allocation7], %s718_s6  ;;  %s355_s14 = sshll.u32 %s588_s13, 7 }
  0x55   : > { %v198_v1 = vand.u32 2147483647, %v196_v0  ;;  %vm215_vm0 = vcmp.ge.f32.partialorder %v196_v0, 0.0  ;;  %v202_v16 = vmax.f32 %v196_v0, 0.0  ;;  %v203_v17 = vmul.f32 %v197_v8, %v196_v0  ;;  %s250_s7 = sshll.u32 %s195_s20, 4  ;;  %s739_s16 = scalar_lea.hbm %s783_s2, %s355_s14  ;;  %s734_s7 = int_to_ptr.vmem [resolvable:$true] %s250_s7 }
  0x56   : > { %v220_v21 = vmul.f32 -0.5, %v197_v8  ;;  %s237_s24 = scalar_lea.sflag [#allocation4], %s715_s5  ;;  %s477_s17 = scalar_lea.vmem %s734_s7, 128 }
  0x57   : > { %v199_v2 = vsub.f32 0.0, %v198_v1  ;;  %v204_v20 = vsub.f32 %v202_v16, %v203_v17  ;;  %p478_p13 = scmp.ne.s32.totalorder %s734_s7, %s477_s17  ;;  %p796_p3 = scmp.ne.s32.totalorder %s788_s21, 0 }
  0x58   : > { %v221_v24 = vadd.f32 0.75, %v220_v21  ;;  %s551_s13 = smov [#allocation7]  }
  0x59   : > { %v200_v3 = vmul.f32 1.442695, %v199_v2  ;;  %p479_p7 = pnand %p478_p13, %p796_p3  ;;  %s481_s19 = sshll.u32 %s551_s13, 4  ;;  %s482_s19 = int_to_ptr.vmem [resolvable:$false] %s481_s19 }
  0x5a   : > { %s483_s23 = scalar_lea.vmem %s482_s19, 256  ;;  %p484_p8 = scmp.lt.s32.totalorder %s734_s7, %s482_s19 }
  0x5b   : > { %409 = vpow2.f32 %v200_v3  ;;  %p480_p5 = pneg %p479_p7  ;;  %p485_p9 = scmp.lt.s32.totalorder %s483_s23, %s477_s17 }
  0x5d   : > { %p486_p0 = por %p485_p9, %p484_p8 }
  0x5f   : > { %p487_p1 = pnand %p486_p0, %p480_p5 }
  0x65   : > { %v410_v4 = vpop.eup %409 }
  0x66   : > { %v205_v5 = vadd.f32 1.0, %v410_v4  ;;  %v216_v6 = vsel %vm215_vm0, 1.0, %v410_v4  ;;  %v208_v9 = vmul.f32 -0.5, %v410_v4  ;;  %v211_v15 = vand.u32 2147483647, %v410_v4 }
  0x68   : > { %411 = vrcp.f32 %v205_v5  ;;  %v209_v12 = vadd.f32 1.0, %v208_v9  ;;  %vm212_vm1 = vcmp.lt.f32.partialorder %v211_v15, 0.0004427343 }
  0x69   : > { %413 = vlog2.f32 %v205_v5 }
  0x6a   : > { %v210_v19 = vmul.f32 %v410_v4, %v209_v12 }
  0x72   : > { %v412_v7 = vpop.eup %411 }
  0x73   : > { %v219_v10 = vmul.f32 %v412_v7, %v216_v6  ;;  %v414_v14 = vpop.eup %413 }
  0x74   : > { %v207_v18 = vmul.f32 0.6931472, %v414_v14 }
  0x75   : > { %v222_v11 = vsub.f32 %v197_v8, %v219_v10 }
  0x76   : > { %v213_v22 = vsel %vm212_vm1, %v210_v19, %v207_v18 }
  0x77   : > { %v223_v13 = vand.u32 2147483647, %v222_v11  ;;  %v214_v23 = vadd.f32 %v213_v22, %v204_v20 }
  0x79   : > { %415 = vrsqrt.f32 %v223_v13  ;;  %vm226_vm2 = vcmp.eq.f32.partialorder %v223_v13, inf  ;;  %v229_v26 = vand.u32 2147483648, %v223_v13  ;;  %vm228_vm3 = vcmp.eq.f32.partialorder %v223_v13, 0.0 }
  0x7a   : > { %v232_v29 = vmul.f32 %v221_v24, %v214_v23 }
  0x83   : > { %v416_v25 = vpop.eup %415 }
  0x84   : > { %v225_v27 = vmul.f32 %v416_v25, %v223_v13 }
  0x86   : > { %v227_v28 = vsel %vm226_vm2, %v223_v13, %v225_v27 }
  0x87   : > { %v230_v30 = vsel %vm228_vm3, %v229_v26, %v227_v28 }
  0x88   : > { %v231_v31 = vmul.f32 %v230_v30, %v223_v13 }
  0x8a   : > { %v233_v32 = vmul.f32 %v232_v29, %v231_v31 }
  0x8c   : > { %235 = vst [vmem:[%s195_s20] sm:$0xff] %v233_v32 }
  0x8d   : > { %490 = shalt.err (!%p487_p1)
}
  0x8e   : > { %s491_s25 = scalar_lea.hbm %s739_s16, 128  ;;  %s495_s5 = scalar_lea.hbm %s783_s2, 256 }
  0x8f   : > { %p492_p11 = scmp.ne.s32.totalorder %s739_s16, %s491_s25  ;;  %p496_p4 = scmp.lt.u32.totalorder %s739_s16, %s783_s2 }
  0x90   : > { %p497_p10 = scmp.lt.u32.totalorder %s495_s5, %s491_s25  ;;  %p499_p13 = scmp.lt.u32.totalorder %s491_s25, %s739_s16 }
  0x91   : > { %p493_p12 = pnand %p492_p11, %p796_p3 }
  0x92   : > { %p498_p6 = por %p497_p10, %p496_p4 }
  0x93   : > { %p494_p2 = pneg %p493_p12 }
  0x94   : > { %p500_p7 = por %p499_p13, %p498_p6 }
  0x96   : > { %p501_p5 = pnand %p500_p7, %p494_p2 }
  0x98   : > { %504 = shalt.err (!%p501_p5)
}
  0x99   : > { %362 = dma.vmem_to_hbm [thread:$0]  (%p796_p3), %s734_s7, 128, %s739_s16, %s237_s24  }
  0x9a PF: > { %s262_s30 = sand.u32 1, %s535_s9   ;;  %p797_p8 = scmp.ne.s32.totalorder %s789_s22, 0 }
  0x9b   : > { %p798_p9 = scmp.ge.s32.totalorder %s547_s12, 2  ;;  %s263_s3 = scalar_lea.sflag [#allocation4], %s262_s30 }
  0x9d   : > { %p372_p0 = pnand %p798_p9, %p797_p8 }
  0x9f   : > { %530 = dma.done.wait (!%p372_p0), %s263_s3, 128  }
  0xa0   : > { %532 = vsyncadd (!%p372_p0), %s263_s3, 4294967168  ;;  %p18_p1 = scmp.ge.s32.totalorder %s592_s15, 4   ;;  %s799_s9 = smov %s539_s10 }
  0xa1   : > { %s800_s10 = smov %s543_s11  ;;  %s801_s11 = smov %s604_s18 }
  0xa2   : > { %s802_s12 = smov %s592_s15  ;;  %20 = sbr.rel (!%p18_p1) target bundleno = 7 (0x7), region = 86 }
  0xa9   :  { %268 = vsyncpa [#allocation3], 1 }
  0xaa   :  { %270 = vsyncpa [#allocation3 + $0x1], 1 }
  0xab   :  { %271 = vsyncpa [#allocation6], 1 }
  0xac   :  { %273 = vsyncpa [#allocation6 + $0x1], 1 }
  0xad   :  { %274 = vsyncpa [#allocation4], 1 }
  0xae   :  { %276 = vsyncpa [#allocation4 + $0x1], 1 }

</bundles_post_ra>
